<compile_context>
chip_gen: v7x
topology: tpu7x:2x2x1
jax: 0.10.0
libtpu: 0.0.40
codegen_flags: <defaults>
</compile_context>

<pallas_src>
import functools
import math

import jax
import jax.numpy as jnp
from jax.experimental import pallas as pl
from jax.experimental.pallas import tpu as pltpu

_EPS = 1e-5
_LANES = 128
_SUBLANES = 8
_ROW_ALIGN = 16
_MAX_TILE_ROWS = 2048                  # 1 MiB f32 block per input per step
_VMEM_BUDGET = 12 * 1024 * 1024        # double-buffered inputs budget (all gens)


def _num_tensorcores():
    """2 TensorCores per chip on v7x; 1 on v5e/v6e (and anything unknown)."""
    try:
        kind = jax.devices()[0].device_kind.lower()
    except Exception:
        return 1
    return 2 if ("v7" in kind or "7x" in kind) else 1


def _slab_and_tail(x):
    """Lane-dense (rows,128) view of the 128-aligned prefix (zero-copy when
    numel % 128 == 0) plus the <128-element remainder (or None)."""
    flat = x.reshape(-1)
    n = flat.shape[0]
    n_main = (n // _LANES) * _LANES
    if n_main == n:
        return flat.reshape(-1, _LANES), None
    slab = flat[:n_main].reshape(-1, _LANES) if n_main else None
    return slab, flat[n_main:]


def _make_kernel(lik_cfgs, mse_cfg, steps_per_core):
    """cfg = (tile_offset, n_tiles, rows, block_rows, ragged) -- all static."""
    n_lik = len(lik_cfgs)
    have_mse = mse_cfg is not None

    def kernel(*args):
        lik_refs = args[:n_lik]
        idx = n_lik
        if have_mse:
            xhat_ref, tgt_ref = args[idx], args[idx + 1]
            idx += 2
        log_out, sq_out, log_acc, sq_acc = args[idx:idx + 4]

        i = pl.program_id(1)
        g = pl.program_id(0) * steps_per_core + i   # global tile index

        @pl.when(i == 0)
        def _init():
            log_acc[...] = jnp.zeros_like(log_acc)
            sq_acc[...] = jnp.zeros_like(sq_acc)

        def _accum(acc_ref, v, tb):
            # (tb,128) -> (8,128) row-group sum: pure VPU adds, no per-step XLU.
            if tb % _SUBLANES == 0:
                acc_ref[...] += jnp.sum(
                    v.reshape(tb // _SUBLANES, _SUBLANES, _LANES), axis=0)
            else:
                # Tiny single-tile segment (< 8 rows): cold path, runs once.
                acc_ref[0:1, :] += jnp.sum(v, axis=0, keepdims=True)

        # ---- likelihood segments: sum(log(clamp(x, eps, 1))) ----------------
        for ref, (off_k, t_k, rows_k, tb_k, ragged_k) in zip(lik_refs, lik_cfgs):

            def _lik_tile(masked, ref=ref, tb=tb_k, rows=rows_k, t=t_k):
                x = ref[...].astype(jnp.float32)
                if masked:
                    # Only the last (ragged) tile of this segment runs this
                    # branch; bound is static and the iota lives inside the
                    # cold branch (no per-step mask cost).
                    valid = rows - (t - 1) * tb
                    ridx = jax.lax.broadcasted_iota(jnp.int32, (tb, _LANES), 0)
                    x = jnp.where(ridx < valid, x, 1.0)   # log(clip(1)) == 0
                _accum(log_acc, jnp.log(jnp.clip(x, _EPS, 1.0)), tb)

            if ragged_k:
                pl.when((g >= off_k) & (g < off_k + t_k - 1))(
                    functools.partial(_lik_tile, False))
                pl.when(g == off_k + t_k - 1)(functools.partial(_lik_tile, True))
            else:
                pl.when((g >= off_k) & (g < off_k + t_k))(
                    functools.partial(_lik_tile, False))

        # ---- MSE segment: sum((x_hat - target)^2) ----------------------------
        if have_mse:
            off_m, t_m, rows_m, tb_m, ragged_m = mse_cfg

            def _mse_tile(masked, tb=tb_m, rows=rows_m, t=t_m):
                d = (xhat_ref[...].astype(jnp.float32)
                     - tgt_ref[...].astype(jnp.float32))
                if masked:
                    valid = rows - (t - 1) * tb
                    ridx = jax.lax.broadcasted_iota(jnp.int32, (tb, _LANES), 0)
                    d = jnp.where(ridx < valid, d, 0.0)
                _accum(sq_acc, d * d, tb)

            if ragged_m:
                pl.when((g >= off_m) & (g < off_m + t_m - 1))(
                    functools.partial(_mse_tile, False))
                pl.when(g == off_m + t_m - 1)(functools.partial(_mse_tile, True))
            else:
                pl.when((g >= off_m) & (g < off_m + t_m))(
                    functools.partial(_mse_tile, False))

        # ---- flush per-core partials once, as lane-dense (8,128) blocks ------
        @pl.when(i == pl.num_programs(1) - 1)
        def _flush():
            log_out[...] = log_acc[...]
            sq_out[...] = sq_acc[...]

    return kernel


def _fused_rd_sums(likelihoods, x_hat, target):
    """(sum_k sum(log(clamp(lik_k,eps,1))), sum((x_hat-target)^2)) as f32
    scalars, computed by one fused pallas_call (+ tiny jnp tail handling)."""
    lik_pairs = [_slab_and_tail(l) for l in likelihoods]
    a_slab, a_tail = _slab_and_tail(x_hat)
    b_slab, b_tail = _slab_and_tail(target)

    # -- wrapper-side contributions of the <128-element remainders -----------
    log_tail = jnp.float32(0.0)
    for _, t in lik_pairs:
        if t is not None:
            log_tail = log_tail + jnp.sum(
                jnp.log(jnp.clip(t.astype(jnp.float32), _EPS, 1.0)))
    sq_tail = jnp.float32(0.0)
    if a_tail is not None:
        dt = a_tail.astype(jnp.float32) - b_tail.astype(jnp.float32)
        sq_tail = jnp.sum(dt * dt)

    lik_slabs = [s for s, _ in lik_pairs if s is not None]
    have_mse = a_slab is not None
    if not lik_slabs and not have_mse:
        return log_tail, sq_tail

    # -- static per-segment tiling (VMEM-budgeted tile size) ------------------
    kernel_slabs = lik_slabs + ([a_slab] if have_mse else [])
    per_row_bytes = sum(2 * _LANES * s.dtype.itemsize for s in kernel_slabs)
    if have_mse:
        per_row_bytes += 2 * _LANES * b_slab.dtype.itemsize
    tile_rows = (_VMEM_BUDGET // per_row_bytes) // _ROW_ALIGN * _ROW_ALIGN
    tile_rows = min(_MAX_TILE_ROWS, max(_ROW_ALIGN, tile_rows))

    cfgs = []
    off = 0
    for s in kernel_slabs:
        rows = s.shape[0]
        tb = tile_rows if rows >= tile_rows else rows   # full-dim block if small
        tiles = -(-rows // tb)
        cfgs.append((off, tiles, rows, tb, rows % tb != 0))
        off += tiles
    lik_cfgs = cfgs[:len(lik_slabs)]
    mse_cfg = cfgs[-1] if have_mse else None
    total_tiles = off

    n_cores = min(_num_tensorcores(), total_tiles)
    steps_per_core = -(-total_tiles // n_cores)

    def in_spec(cfg):
        off_k, t_k, _, tb_k, _ = cfg

        def imap(p, i, off_k=off_k, t_k=t_k):
            g = p * steps_per_core + i
            # Clamp into this segment's tile range: outside it the block index
            # is constant, so Pallas skips redundant re-fetch DMAs.
            return (jnp.minimum(jnp.maximum(g - off_k, 0), t_k - 1), 0)

        return pl.BlockSpec((tb_k, _LANES), imap)

    inputs = list(lik_slabs)
    in_specs = [in_spec(c) for c in lik_cfgs]
    if have_mse:
        inputs += [a_slab, b_slab]
        in_specs += [in_spec(mse_cfg), in_spec(mse_cfg)]

    out_specs = [pl.BlockSpec((_SUBLANES, _LANES), lambda p, i: (p, 0)),
                 pl.BlockSpec((_SUBLANES, _LANES), lambda p, i: (p, 0))]
    out_shape = [jax.ShapeDtypeStruct((n_cores * _SUBLANES, _LANES), jnp.float32)
                 for _ in range(2)]

    total_elems = int(sum(s.size for s in inputs))
    lik_elems = int(sum(s.size for s in lik_slabs))
    in_bytes = int(sum(s.size * s.dtype.itemsize for s in inputs))
    cost = pl.CostEstimate(
        flops=3 * total_elems,
        transcendentals=lik_elems,
        bytes_accessed=in_bytes + 2 * n_cores * _SUBLANES * _LANES * 4)

    first_axis = pltpu.CORE_PARALLEL if n_cores > 1 else pltpu.ARBITRARY

    log_part, sq_part = pl.pallas_call(
        _make_kernel(lik_cfgs, mse_cfg, steps_per_core),
        out_shape=out_shape,
        grid_spec=pltpu.PrefetchScalarGridSpec(
            num_scalar_prefetch=0,
            grid=(n_cores, steps_per_core),
            in_specs=in_specs,
            out_specs=out_specs,
            scratch_shapes=[pltpu.VMEM((_SUBLANES, _LANES), jnp.float32),
                            pltpu.VMEM((_SUBLANES, _LANES), jnp.float32)],
        ),
        compiler_params=pltpu.CompilerParams(
            dimension_semantics=(first_axis, pltpu.ARBITRARY)),
        cost_estimate=cost,
    )(*inputs)

    # Single deferred cross-lane reduce over the tiny lane-dense partials.
    return jnp.sum(log_part) + log_tail, jnp.sum(sq_part) + sq_tail


def rate_distortion_loss(output, target, lmbda=0.01, metrics='mse'):
    """output: dict with 'x_hat' [N,C,H,W] and 'likelihoods' dict of arrays.
    target: [N,C,H,W].  Fully jittable (no host syncs)."""
    N, _, H, W = target.shape
    num_pixels = N * H * W

    out = {}
    if metrics == 'mse':
        liks = list(output['likelihoods'].values())
        log_sum, sq_sum = _fused_rd_sums(liks, output['x_hat'], target)
        out['bpp_loss'] = log_sum / (-math.log(2) * num_pixels)
        out['mse_loss'] = sq_sum / jnp.float32(target.size)
        out['ms_ssim_loss'] = None
        out['loss'] = lmbda * 255 ** 2 * out['mse_loss'] + out['bpp_loss']
    elif metrics == 'ms-ssim':
        # TODO(synk): ms-ssim (multi-scale SSIM gaussian pyramid) not implemented.
        raise NotImplementedError("ms-ssim metric not implemented")
    else:
        raise ValueError(f"unknown metrics: {metrics}")
    return out


class RateDistortionLoss:
    """Functional stand-in for the PyTorch module (metrics='mse')."""

    def __init__(self, lmbda=0.01, metrics='mse'):
        self.lmbda = lmbda
        self.metrics = metrics

    def set_lmbda(self, lmbda):
        self.lmbda = lmbda

    def __call__(self, output, target):
        return rate_distortion_loss(output, target, self.lmbda, self.metrics)


def _reference(output, target, lmbda):
    N, _, H, W = target.shape
    num_pixels = N * H * W
    bpp = sum(jnp.sum(jnp.log(jnp.clip(l, _EPS, 1.0))) / (-math.log(2) * num_pixels)
              for l in output['likelihoods'].values())
    mse = jnp.mean((output['x_hat'] - target) ** 2)
    return bpp, mse, lmbda * 255 ** 2 * mse + bpp


if __name__ == "__main__":
    loss_fn = jax.jit(lambda o, t: rate_distortion_loss(o, t, lmbda=0.01))

    # ---- test 1: small shapes (single-tile segments + sub-128 tail path) ----
    key = jax.random.PRNGKey(0)
    k1, k2, k3, k4, k5 = jax.random.split(key, 5)
    N, C, H, W = 2, 4, 16, 16
    target = jax.random.uniform(k1, (N, C, H, W), dtype=jnp.float32)
    x_hat = target + 0.05 * jax.random.normal(k2, (N, C, H, W), dtype=jnp.float32)
    lik_y = jax.random.uniform(k3, (N, 8, H, W), jnp.float32, 1e-4, 1.0)
    lik_z = jax.random.uniform(k4, (N, 8, H // 2, W // 2), jnp.float32, 1e-4, 1.0)
    lik_w = jax.random.uniform(k5, (1, 1, 5, 5), jnp.float32, 1e-4, 1.0)  # tail-only
    output = {'x_hat': x_hat, 'likelihoods': {'y': lik_y, 'z': lik_z, 'w': lik_w}}

    result = loss_fn(output, target)
    jax.block_until_ready(result['loss'])
    ref_bpp, ref_mse, ref_loss = _reference(output, target, 0.01)
    assert jnp.allclose(result['bpp_loss'], ref_bpp, rtol=1e-5, atol=1e-5)
    assert jnp.allclose(result['mse_loss'], ref_mse, rtol=1e-5, atol=1e-6)
    assert jnp.allclose(result['loss'], ref_loss, rtol=1e-5, atol=1e-5)

    # ---- test 2: larger shapes (multi-tile + ragged-last-tile masked path) --
    j1, j2, j3, j4, j5 = jax.random.split(jax.random.PRNGKey(1), 5)
    target2 = jax.random.uniform(j1, (2, 3, 256, 256), dtype=jnp.float32)
    x_hat2 = target2 + 0.05 * jax.random.normal(j2, target2.shape, dtype=jnp.float32)
    lik2_a = jax.random.uniform(j3, (2, 192, 16, 16), jnp.float32, 1e-4, 1.0)
    lik2_b = jax.random.uniform(j4, (2, 192, 8, 8), jnp.float32, 1e-4, 1.0)
    lik2_c = jax.random.uniform(j5, (2, 320, 32, 32), jnp.float32, 1e-4, 1.0)
    output2 = {'x_hat': x_hat2,
               'likelihoods': {'a': lik2_a, 'b': lik2_b, 'c': lik2_c}}

    result2 = loss_fn(output2, target2)
    jax.block_until_ready(result2['loss'])
    ref_bpp2, ref_mse2, ref_loss2 = _reference(output2, target2, 0.01)
    assert jnp.allclose(result2['bpp_loss'], ref_bpp2, rtol=1e-4, atol=1e-4)
    assert jnp.allclose(result2['mse_loss'], ref_mse2, rtol=1e-4, atol=1e-6)
    assert jnp.allclose(result2['loss'], ref_loss2, rtol=1e-4, atol=1e-4)

    print("KERNEL_OK")
</pallas_src>

<mosaic_0001>
module attributes {stable_mosaic.version = 11 : i64} {
  func.func @kernel(%arg0: i32, %arg1: i32, %arg2: memref<32x128xf32, #tpu.memory_space<vmem>>, %arg3: memref<8x128xf32, #tpu.memory_space<vmem>>, %arg4: memref<16x128xf32, #tpu.memory_space<vmem>>, %arg5: memref<16x128xf32, #tpu.memory_space<vmem>>, %arg6: memref<8x128xf32, #tpu.memory_space<vmem>>, %arg7: memref<8x128xf32, #tpu.memory_space<vmem>>, %arg8: memref<8x128xf32, #tpu.memory_space<vmem>>, %arg9: memref<8x128xf32, #tpu.memory_space<vmem>>) attributes {dimension_semantics = [#tpu.dimension_semantics<arbitrary>, #tpu.dimension_semantics<arbitrary>], iteration_bounds = array<i64: 1, 3>, scalar_prefetch = 0 : i64, scratch_operands = 2 : i64, tpu.core_type = #tpu.core_type<tc>, window_params = [{transform_indices = @transform_0, window_bounds = array<i64: 32, 128>}, {transform_indices = @transform_1, window_bounds = array<i64: 8, 128>}, {transform_indices = @transform_2, window_bounds = array<i64: 16, 128>}, {transform_indices = @transform_3, window_bounds = array<i64: 16, 128>}, {transform_indices = @transform_4, window_bounds = array<i64: 8, 128>}, {transform_indices = @transform_5, window_bounds = array<i64: 8, 128>}]} {
    %c3_i32 = arith.constant 3 : i32
    %0 = arith.muli %arg0, %c3_i32 : i32
    %1 = arith.addi %0, %arg1 : i32
    %c0_i32 = arith.constant 0 : i32
    %2 = arith.cmpi eq, %arg1, %c0_i32 : i32
    %3 = arith.extui %2 : i1 to i32
    %c0_i32_0 = arith.constant 0 : i32
    %4 = arith.cmpi ne, %3, %c0_i32_0 : i32
    scf.if %4 {
      %cst = arith.constant 0.000000e+00 : f32
      %23 = vector.broadcast %cst : f32 to vector<8x128xf32>
      %c0 = arith.constant 0 : index
      %c0_10 = arith.constant 0 : index
      %24 = vector.load %arg8[%c0, %c0_10] : memref<8x128xf32, #tpu.memory_space<vmem>>, vector<8x128xf32>
      tpu.vector_store %arg8[%c0, %c0_10], %23 {strides = array<i32>} : memref<8x128xf32, #tpu.memory_space<vmem>>, vector<8x128xf32>,
      %cst_11 = arith.constant 0.000000e+00 : f32
      %25 = vector.broadcast %cst_11 : f32 to vector<8x128xf32>
      %c0_12 = arith.constant 0 : index
      %c0_13 = arith.constant 0 : index
      %26 = vector.load %arg9[%c0_12, %c0_13] : memref<8x128xf32, #tpu.memory_space<vmem>>, vector<8x128xf32>
      tpu.vector_store %arg9[%c0_12, %c0_13], %25 {strides = array<i32>} : memref<8x128xf32, #tpu.memory_space<vmem>>, vector<8x128xf32>,
    } else {
    }
    %c0_i32_1 = arith.constant 0 : i32
    %5 = arith.cmpi sge, %1, %c0_i32_1 : i32
    %c1_i32 = arith.constant 1 : i32
    %6 = arith.cmpi slt, %1, %c1_i32 : i32
    %7 = arith.andi %5, %6 : i1
    %8 = arith.extui %7 : i1 to i32
    %c0_i32_2 = arith.constant 0 : i32
    %9 = arith.cmpi ne, %8, %c0_i32_2 : i32
    scf.if %9 {
      %c0 = arith.constant 0 : index
      %c0_10 = arith.constant 0 : index
      %23 = vector.load %arg2[%c0, %c0_10] : memref<32x128xf32, #tpu.memory_space<vmem>>, vector<32x128xf32>
      %cst = arith.constant 9.99999974E-6 : f32
      %cst_11 = arith.constant 1.000000e+00 : f32
      %24 = vector.broadcast %cst : f32 to vector<32x128xf32>
      %25 = arith.maximumf %24, %23 : vector<32x128xf32>
      %26 = vector.broadcast %cst_11 : f32 to vector<32x128xf32>
      %27 = arith.minimumf %26, %25 : vector<32x128xf32>
      %28 = math.log %27 : vector<32x128xf32>
      %c0_12 = arith.constant 0 : index
      %c0_13 = arith.constant 0 : index
      %29 = vector.load %arg8[%c0_12, %c0_13] : memref<8x128xf32, #tpu.memory_space<vmem>>, vector<8x128xf32>
      %30 = vector.shape_cast %28 : vector<32x128xf32> to vector<4x8x128xf32>
      %cst_14 = arith.constant dense<0.000000e+00> : vector<8x128xf32>
      %31 = vector.multi_reduction <add>, %30, %cst_14 [0] : vector<4x8x128xf32> to vector<8x128xf32>
      %32 = arith.addf %29, %31 : vector<8x128xf32>
      %c0_15 = arith.constant 0 : index
      %c0_16 = arith.constant 0 : index
      %33 = vector.load %arg8[%c0_15, %c0_16] : memref<8x128xf32, #tpu.memory_space<vmem>>, vector<8x128xf32>
      tpu.vector_store %arg8[%c0_15, %c0_16], %32 {strides = array<i32>} : memref<8x128xf32, #tpu.memory_space<vmem>>, vector<8x128xf32>,
    } else {
    }
    %c1_i32_3 = arith.constant 1 : i32
    %10 = arith.cmpi sge, %1, %c1_i32_3 : i32
    %c2_i32 = arith.constant 2 : i32
    %11 = arith.cmpi slt, %1, %c2_i32 : i32
    %12 = arith.andi %10, %11 : i1
    %13 = arith.extui %12 : i1 to i32
    %c0_i32_4 = arith.constant 0 : i32
    %14 = arith.cmpi ne, %13, %c0_i32_4 : i32
    scf.if %14 {
      %c0 = arith.constant 0 : index
      %c0_10 = arith.constant 0 : index
      %23 = vector.load %arg3[%c0, %c0_10] : memref<8x128xf32, #tpu.memory_space<vmem>>, vector<8x128xf32>
      %cst = arith.constant 9.99999974E-6 : f32
      %cst_11 = arith.constant 1.000000e+00 : f32
      %24 = vector.broadcast %cst : f32 to vector<8x128xf32>
      %25 = arith.maximumf %24, %23 : vector<8x128xf32>
      %26 = vector.broadcast %cst_11 : f32 to vector<8x128xf32>
      %27 = arith.minimumf %26, %25 : vector<8x128xf32>
      %28 = math.log %27 : vector<8x128xf32>
      %c0_12 = arith.constant 0 : index
      %c0_13 = arith.constant 0 : index
      %29 = vector.load %arg8[%c0_12, %c0_13] : memref<8x128xf32, #tpu.memory_space<vmem>>, vector<8x128xf32>
      %30 = vector.shape_cast %28 : vector<8x128xf32> to vector<1x8x128xf32>
      %cst_14 = arith.constant dense<0.000000e+00> : vector<8x128xf32>
      %31 = vector.multi_reduction <add>, %30, %cst_14 [0] : vector<1x8x128xf32> to vector<8x128xf32>
      %32 = arith.addf %29, %31 : vector<8x128xf32>
      %c0_15 = arith.constant 0 : index
      %c0_16 = arith.constant 0 : index
      %33 = vector.load %arg8[%c0_15, %c0_16] : memref<8x128xf32, #tpu.memory_space<vmem>>, vector<8x128xf32>
      tpu.vector_store %arg8[%c0_15, %c0_16], %32 {strides = array<i32>} : memref<8x128xf32, #tpu.memory_space<vmem>>, vector<8x128xf32>,
    } else {
    }
    %c2_i32_5 = arith.constant 2 : i32
    %15 = arith.cmpi sge, %1, %c2_i32_5 : i32
    %c3_i32_6 = arith.constant 3 : i32
    %16 = arith.cmpi slt, %1, %c3_i32_6 : i32
    %17 = arith.andi %15, %16 : i1
    %18 = arith.extui %17 : i1 to i32
    %c0_i32_7 = arith.constant 0 : i32
    %19 = arith.cmpi ne, %18, %c0_i32_7 : i32
    scf.if %19 {
      %c0 = arith.constant 0 : index
      %c0_10 = arith.constant 0 : index
      %23 = vector.load %arg4[%c0, %c0_10] : memref<16x128xf32, #tpu.memory_space<vmem>>, vector<16x128xf32>
      %c0_11 = arith.constant 0 : index
      %c0_12 = arith.constant 0 : index
      %24 = vector.load %arg5[%c0_11, %c0_12] : memref<16x128xf32, #tpu.memory_space<vmem>>, vector<16x128xf32>
      %25 = arith.subf %23, %24 : vector<16x128xf32>
      %26 = arith.mulf %25, %25 : vector<16x128xf32>
      %c0_13 = arith.constant 0 : index
      %c0_14 = arith.constant 0 : index
      %27 = vector.load %arg9[%c0_13, %c0_14] : memref<8x128xf32, #tpu.memory_space<vmem>>, vector<8x128xf32>
      %28 = vector.shape_cast %26 : vector<16x128xf32> to vector<2x8x128xf32>
      %cst = arith.constant dense<0.000000e+00> : vector<8x128xf32>
      %29 = vector.multi_reduction <add>, %28, %cst [0] : vector<2x8x128xf32> to vector<8x128xf32>
      %30 = arith.addf %27, %29 : vector<8x128xf32>
      %c0_15 = arith.constant 0 : index
      %c0_16 = arith.constant 0 : index
      %31 = vector.load %arg9[%c0_15, %c0_16] : memref<8x128xf32, #tpu.memory_space<vmem>>, vector<8x128xf32>
      tpu.vector_store %arg9[%c0_15, %c0_16], %30 {strides = array<i32>} : memref<8x128xf32, #tpu.memory_space<vmem>>, vector<8x128xf32>,
    } else {
    }
    %c2_i32_8 = arith.constant 2 : i32
    %20 = arith.cmpi eq, %arg1, %c2_i32_8 : i32
    %21 = arith.extui %20 : i1 to i32
    %c0_i32_9 = arith.constant 0 : i32
    %22 = arith.cmpi ne, %21, %c0_i32_9 : i32
    scf.if %22 {
      %c0 = arith.constant 0 : index
      %c0_10 = arith.constant 0 : index
      %23 = vector.load %arg8[%c0, %c0_10] : memref<8x128xf32, #tpu.memory_space<vmem>>, vector<8x128xf32>
      %c0_11 = arith.constant 0 : index
      %c0_12 = arith.constant 0 : index
      %24 = vector.load %arg6[%c0_11, %c0_12] : memref<8x128xf32, #tpu.memory_space<vmem>>, vector<8x128xf32>
      tpu.vector_store %arg6[%c0_11, %c0_12], %23 {strides = array<i32>} : memref<8x128xf32, #tpu.memory_space<vmem>>, vector<8x128xf32>,
      %c0_13 = arith.constant 0 : index
      %c0_14 = arith.constant 0 : index
      %25 = vector.load %arg9[%c0_13, %c0_14] : memref<8x128xf32, #tpu.memory_space<vmem>>, vector<8x128xf32>
      %c0_15 = arith.constant 0 : index
      %c0_16 = arith.constant 0 : index
      %26 = vector.load %arg7[%c0_15, %c0_16] : memref<8x128xf32, #tpu.memory_space<vmem>>, vector<8x128xf32>
      tpu.vector_store %arg7[%c0_15, %c0_16], %25 {strides = array<i32>} : memref<8x128xf32, #tpu.memory_space<vmem>>, vector<8x128xf32>,
    } else {
    }
    return
  }
  func.func @transform_0(%arg0: i32, %arg1: i32) -> (i32, i32) {
    %c3_i32 = arith.constant 3 : i32
    %0 = arith.muli %arg0, %c3_i32 : i32
    %1 = arith.addi %0, %arg1 : i32
    %c0_i32 = arith.constant 0 : i32
    %2 = arith.subi %1, %c0_i32 : i32
    %c0_i32_0 = arith.constant 0 : i32
    %3 = arith.maxsi %2, %c0_i32_0 : i32
    %c0_i32_1 = arith.constant 0 : i32
    %4 = arith.minsi %3, %c0_i32_1 : i32
    %c0_i32_2 = arith.constant 0 : i32
    %c0_i32_3 = arith.constant 0 : i32
    return %4, %c0_i32_2 : i32, i32
  }
  func.func @transform_1(%arg0: i32, %arg1: i32) -> (i32, i32) {
    %c3_i32 = arith.constant 3 : i32
    %0 = arith.muli %arg0, %c3_i32 : i32
    %1 = arith.addi %0, %arg1 : i32
    %c1_i32 = arith.constant 1 : i32
    %2 = arith.subi %1, %c1_i32 : i32
    %c0_i32 = arith.constant 0 : i32
    %3 = arith.maxsi %2, %c0_i32 : i32
    %c0_i32_0 = arith.constant 0 : i32
    %4 = arith.minsi %3, %c0_i32_0 : i32
    %c0_i32_1 = arith.constant 0 : i32
    %c0_i32_2 = arith.constant 0 : i32
    return %4, %c0_i32_1 : i32, i32
  }
  func.func @transform_2(%arg0: i32, %arg1: i32) -> (i32, i32) {
    %c3_i32 = arith.constant 3 : i32
    %0 = arith.muli %arg0, %c3_i32 : i32
    %1 = arith.addi %0, %arg1 : i32
    %c2_i32 = arith.constant 2 : i32
    %2 = arith.subi %1, %c2_i32 : i32
    %c0_i32 = arith.constant 0 : i32
    %3 = arith.maxsi %2, %c0_i32 : i32
    %c0_i32_0 = arith.constant 0 : i32
    %4 = arith.minsi %3, %c0_i32_0 : i32
    %c0_i32_1 = arith.constant 0 : i32
    %c0_i32_2 = arith.constant 0 : i32
    return %4, %c0_i32_1 : i32, i32
  }
  func.func @transform_3(%arg0: i32, %arg1: i32) -> (i32, i32) {
    %c3_i32 = arith.constant 3 : i32
    %0 = arith.muli %arg0, %c3_i32 : i32
    %1 = arith.addi %0, %arg1 : i32
    %c2_i32 = arith.constant 2 : i32
    %2 = arith.subi %1, %c2_i32 : i32
    %c0_i32 = arith.constant 0 : i32
    %3 = arith.maxsi %2, %c0_i32 : i32
    %c0_i32_0 = arith.constant 0 : i32
    %4 = arith.minsi %3, %c0_i32_0 : i32
    %c0_i32_1 = arith.constant 0 : i32
    %c0_i32_2 = arith.constant 0 : i32
    return %4, %c0_i32_1 : i32, i32
  }
  func.func @transform_4(%arg0: i32, %arg1: i32) -> (i32, i32) {
    %c0_i32 = arith.constant 0 : i32
    %c0_i32_0 = arith.constant 0 : i32
    return %arg0, %c0_i32 : i32, i32
  }
  func.func @transform_5(%arg0: i32, %arg1: i32) -> (i32, i32) {
    %c0_i32 = arith.constant 0 : i32
    %c0_i32_0 = arith.constant 0 : i32
    return %arg0, %c0_i32 : i32, i32
  }
}

</mosaic_0001>

<bundles_post_ra>
// kernel: _lambda_.1
= control target key start
LH: loop header
LB: loop body
LE: loop exit
PB: predicated region body
PF: predicated region fallthrough
CT: control target
= control target key end

     0   :  { %s878_s18 = smov 0   ;;  %s880_s19 = smov 0   ;;  %s948_s0 = inlined_call_operand.vmem [shape: f32[32,128], index: 0, kind: input, shape index: {}]   ;;  %s949_s1 = inlined_call_operand.vmem [shape: f32[8,128], index: 1, kind: input, shape index: {}]   ;;  %s950_s2 = inlined_call_operand.vmem [shape: f32[16,128], index: 2, kind: input, shape index: {}]   ;;  %s951_s3 = inlined_call_operand.vmem [shape: f32[16,128], index: 3, kind: input, shape index: {}]   ;;  %s952_s4 = inlined_call_operand.vmem [shape: f32[8,128], index: 4, kind: output, shape index: {0}]   ;;  %s953_s5 = inlined_call_operand.vmem [shape: f32[8,128], index: 5, kind: output, shape index: {1}]  }
   0x1   :  { %s882_s20 = smov 0  }
   0x2 LB: > { %s25_s21 = sadd.s32 1, %s841_s19  ;;  %p751_p0 = scmp.ge.s32.totalorder %s845_s20, 1  ;;  %s845_s20 = sphi %s882_s20, %s16_s20   ;;  %s841_s19 = sphi %s880_s19, %s955_s19   ;;  %s837_s18 = sphi %s878_s18, %s954_s18  }
   0x3   : > { %p26_p1 = scmp.ge.s32.totalorder %s25_s21, 3  ;;  %p342_p2 = scmp.lt.s32.totalorder %s845_s20, 4 }
   0x5   : > { %s957_s21 = smov (%p26_p1, %s25_s21), 0  ;;  %p343_p3 = pnand %p751_p0, %p342_p2 }
   0x6   : > { %p782_p4 = scmp.ne.s32.totalorder (!%p343_p3), %s837_s18, 0 }
   0x7   : > { %346 = sbr.rel (%p343_p3) target bundleno = 99 (0x63), region = 36 }
   0xe   : > { %503 = sbr.rel (%p782_p4) target bundleno = 21 (0x15), region = 40  ;;  %v847_v0 = vmov (!%p782_p4), 0.0  }
   0xf   : > { %504 = vst [vmem:[#allocation2] sm:$0xff] (!%p782_p4), %v847_v0  ;;  %505 = vst [vmem:[#allocation3] sm:$0xff] (!%p782_p4), %v847_v0 }
  0x15 PF: > { %p506_p5 = scmp.ge.s32.totalorder %s837_s18, 0  ;;  %p507_p6 = scmp.lt.s32.totalorder %s837_s18, 1 }
  0x17   : > { %p508_p7 = pnand %p507_p6, %p506_p5 }
  0x18   : > { %v512_v1 = vld [vmem:[%s948_s0] sm:$0xff] (!%p508_p7)  ;;  %v513_v2 = vld [vmem:[%s948_s0 + $0x8] sm:$0xff] (!%p508_p7)  ;;  %v514_v3 = vld [vmem:[%s948_s0 + $0x10] sm:$0xff] (!%p508_p7) }
  0x19   : > { %511 = sbr.rel (%p508_p7) target bundleno = 52 (0x34), region = 44  ;;  %v515_v4 = vld [vmem:[%s948_s0 + $0x18] sm:$0xff] (!%p508_p7)  ;;  %v516_v5 = vmax.f32 (!%p508_p7), %v512_v1, 1e-05  ;;  %v517_v6 = vmax.f32 (!%p508_p7), %v513_v2, 1e-05 }
  0x1a   : > { %v518_v7 = vmax.f32 (!%p508_p7), %v514_v3, 1e-05  ;;  %v519_v8 = vmax.f32 (!%p508_p7), %v515_v4, 1e-05  ;;  %v532_v23 = vld [vmem:[#allocation2] sm:$0xff] (!%p508_p7) }
  0x1b   : > { %v520_v9 = vmin.f32 (!%p508_p7), %v516_v5, 1.0  ;;  %v521_v10 = vmin.f32 (!%p508_p7), %v517_v6, 1.0 }
  0x1c   : > { %v522_v11 = vmin.f32 (!%p508_p7), %v518_v7, 1.0  ;;  %v523_v12 = vmin.f32 (!%p508_p7), %v519_v8, 1.0 }
  0x1d   : > { %813 = vlog2.f32 (!%p508_p7), %v520_v9 }
  0x1e   : > { %815 = vlog2.f32 (!%p508_p7), %v521_v10 }
  0x1f   : > { %817 = vlog2.f32 (!%p508_p7), %v522_v11 }
  0x20   : > { %819 = vlog2.f32 %v523_v12 }
  0x27   : > { %v814_v13 = vpop.eup %813 }
  0x28   : > { %v816_v14 = vpop.eup %815  ;;  %v525_v15 = vmul.f32 0.6931472, %v814_v13 }
  0x29   : > { %v818_v16 = vpop.eup %817  ;;  %v527_v17 = vmul.f32 0.6931472, %v816_v14 }
  0x2a   : > { %v820_v18 = vpop.eup %819  ;;  %v529_v19 = vmul.f32 0.6931472, %v818_v16 }
  0x2b   : > { %v531_v20 = vmul.f32 0.6931472, %v820_v18  ;;  %v533_v21 = vadd.f32 %v527_v17, %v525_v15 }
  0x2d   : > { %v534_v22 = vadd.f32 %v533_v21, %v529_v19 }
  0x2f   : > { %v535_v24 = vadd.f32 %v534_v22, %v531_v20 }
  0x31   : > { %v536_v25 = vadd.f32 %v535_v24, %v532_v23 }
  0x33   : > { %537 = vst [vmem:[#allocation2] sm:$0xff] %v536_v25 }
  0x34 PF: > { %p538_p8 = scmp.ge.s32.totalorder %s837_s18, 1  ;;  %p539_p9 = scmp.lt.s32.totalorder %s837_s18, 2 }
  0x36   : > { %p540_p10 = pnand %p539_p9, %p538_p8 }
  0x37   : > { %v544_v26 = vld [vmem:[%s949_s1] sm:$0xff] (!%p540_p10) }
  0x38   : > { %543 = sbr.rel (%p540_p10) target bundleno = 76 (0x4c), region = 48  ;;  %v545_v27 = vmax.f32 (!%p540_p10), %v544_v26, 1e-05 }
  0x3a   : > { %v546_v28 = vmin.f32 (!%p540_p10), %v545_v27, 1.0  ;;  %v549_v30 = vld [vmem:[#allocation2] sm:$0xff] (!%p540_p10) }
  0x3c   : > { %821 = vlog2.f32 (!%p540_p10), %v546_v28 }
  0x46   : > { %v822_v29 = vpop.eup %821 }
  0x47   : > { %v548_v31 = vmul.f32 0.6931472, %v822_v29 }
  0x49   : > { %v551_v32 = vadd.f32 %v549_v30, %v548_v31 }
  0x4b   : > { %552 = vst [vmem:[#allocation2] sm:$0xff] %v551_v32 }
  0x4c PF: > { %p553_p11 = scmp.ge.s32.totalorder %s837_s18, 2  ;;  %p554_p12 = scmp.lt.s32.totalorder %s837_s18, 3 }
  0x4e   : > { %p555_p13 = pnand %p554_p12, %p553_p11 }
  0x4f   : > { %v559_v33 = vld [vmem:[%s950_s2] sm:$0xff] (!%p555_p13)  ;;  %v560_v34 = vld [vmem:[%s950_s2 + $0x8] sm:$0xff] (!%p555_p13) }
  0x50   : > { %558 = sbr.rel (%p555_p13) target bundleno = 90 (0x5a), region = 52  ;;  %v561_v35 = vld [vmem:[%s951_s3] sm:$0xff] (!%p555_p13)  ;;  %v562_v36 = vld [vmem:[%s951_s3 + $0x8] sm:$0xff] (!%p555_p13) }
  0x51   : > { %v563_v37 = vsub.f32 (!%p555_p13), %v559_v33, %v561_v35  ;;  %v564_v38 = vsub.f32 (!%p555_p13), %v560_v34, %v562_v36  ;;  %v567_v41 = vld [vmem:[#allocation3] sm:$0xff] (!%p555_p13) }
  0x53   : > { %v565_v39 = vmul.f32 (!%p555_p13), %v563_v37, %v563_v37  ;;  %v566_v40 = vmul.f32 (!%p555_p13), %v564_v38, %v564_v38 }
  0x55   : > { %v568_v42 = vadd.f32 (!%p555_p13), %v566_v40, %v565_v39 }
  0x57   : > { %v569_v43 = vadd.f32 %v568_v42, %v567_v41 }
  0x59   : > { %570 = vst [vmem:[#allocation3] sm:$0xff] %v569_v43 }
  0x5a PF: > { %p783_p0 = scmp.ne.s32.totalorder %s837_s18, 2 }
  0x5b   : > { %v575_v44 = vld [vmem:[#allocation2] sm:$0xff] (!%p783_p0) }
  0x5c   : > { %574 = sbr.rel (%p783_p0) target bundleno = 99 (0x63), region = 56  ;;  %576 = vst [vmem:[%s952_s4] sm:$0xff] (!%p783_p0), %v575_v44 }
  0x60   : > { %v577_v45 = vld [vmem:[#allocation3] sm:$0xff] (!%p783_p0) }
  0x61   : > { %578 = vst [vmem:[%s953_s5] sm:$0xff] (!%p783_p0), %v577_v45 }
  0x63 PF: > { %s16_s20 = sadd.s32 1, %s845_s20   ;;  %s954_s18 = smov %s841_s19 }
  0x64   : > { %p13_p1 = scmp.ge.s32.totalorder %s16_s20, 5   ;;  %s955_s19 = smov %s957_s21 }
  0x66   :  { %15 = sbr.rel (!%p13_p1) target bundleno = 2 (0x2), region = 107 }

</bundles_post_ra>
